<compile_context>
chip_gen: v6e
topology: v6e:2x2x1
jax: 0.10.0
libtpu: 0.0.40
codegen_flags: <defaults>
</compile_context>

<pallas_src>
from functools import partial

import jax
import jax.numpy as jnp
from jax.experimental import pallas as pl
from jax.experimental.pallas import tpu as pltpu

VMEM_LIMIT = 32 * 1024 * 1024  # safe on v5e/v6e/v7x, ample for these tiles


# ----------------------------------------------------------------------------
# Small helpers
# ----------------------------------------------------------------------------
def _round_up(x, m):
    return ((x + m - 1) // m) * m


def _pad2d(x, rows, cols):
    r, c = x.shape
    if r == rows and c == cols:
        return x
    return jnp.pad(x, ((0, rows - r), (0, cols - c)))


# ----------------------------------------------------------------------------
# Pallas kernels
# ----------------------------------------------------------------------------
def _masked_xw_kernel(x_ref, w_ref, m_ref, o_ref):
    """XW = X @ (W * M). Mask multiply in f32, MXU dot in bf16, f32 accumulate."""
    w_eff = (w_ref[...] * m_ref[...]).astype(jnp.bfloat16)          # [Fin, Fout]
    xw = jnp.dot(x_ref[...], w_eff, preferred_element_type=jnp.float32)
    o_ref[...] = xw.astype(o_ref.dtype)


def _adj_matmul_kernel(a_ref, xw_ref, b_ref, o_ref, acc_ref, *, apply_relu):
    """out = A_hat @ XW + b (+ ReLU), K-last grid with f32 accumulator scratch."""
    k = pl.program_id(1)

    @pl.when(k == 0)
    def _():
        acc_ref[...] = jnp.zeros_like(acc_ref)

    acc_ref[...] += jnp.dot(a_ref[...], xw_ref[...],
                            preferred_element_type=jnp.float32)

    @pl.when(k == pl.num_programs(1) - 1)
    def _():
        out = acc_ref[...] + b_ref[...]
        if apply_relu:
            out = jnp.maximum(out, 0.0)
        o_ref[...] = out.astype(o_ref.dtype)


def _masked_linear_kernel(x_ref, w_ref, m_ref, b_ref, o_ref):
    """out = X @ (W_T * M_T) + b  (weight pre-transposed to [Cin, Cout])."""
    w_eff = (w_ref[...] * m_ref[...]).astype(jnp.bfloat16)
    out = jnp.dot(x_ref[...], w_eff, preferred_element_type=jnp.float32)
    out = out + b_ref[...]
    o_ref[...] = out.astype(o_ref.dtype)


# ----------------------------------------------------------------------------
# Wrappers
# ----------------------------------------------------------------------------
def masked_feature_transform(x, w, m, *, tm):
    """x: [N_pad, Fin_pad] bf16; w, m: [Fin, Fout] f32 -> [N_pad, Fout_pad] bf16."""
    n_pad, fin_pad = x.shape
    fout = w.shape[1]
    fout_pad = _round_up(fout, 128)
    w_p = _pad2d(w, fin_pad, fout_pad)
    m_p = _pad2d(m, fin_pad, fout_pad)
    return pl.pallas_call(
        _masked_xw_kernel,
        out_shape=jax.ShapeDtypeStruct((n_pad, fout_pad), jnp.bfloat16),
        grid_spec=pltpu.PrefetchScalarGridSpec(
            num_scalar_prefetch=0,
            grid=(n_pad // tm,),
            in_specs=[pl.BlockSpec((tm, fin_pad), lambda i: (i, 0)),
                      pl.BlockSpec((fin_pad, fout_pad), lambda i: (0, 0)),
                      pl.BlockSpec((fin_pad, fout_pad), lambda i: (0, 0))],
            out_specs=pl.BlockSpec((tm, fout_pad), lambda i: (i, 0)),
        ),
        compiler_params=pltpu.CompilerParams(
            dimension_semantics=("parallel",),
            vmem_limit_bytes=VMEM_LIMIT),
    )(x, w_p, m_p)


def adj_matmul(a_hat, xw, b, *, apply_relu, out_dtype, tm, tk):
    """a_hat: [N_pad, N_pad] bf16; xw: [N_pad, Fout_pad] bf16; b: [Fout] f32."""
    n_pad = a_hat.shape[0]
    fout_pad = xw.shape[1]
    b_p = _pad2d(b.reshape(1, -1).astype(jnp.float32), 1, fout_pad)

    grid_i = n_pad // tm
    grid_k = n_pad // tk
    flops = 2 * n_pad * n_pad * fout_pad
    bytes_accessed = (a_hat.size * a_hat.dtype.itemsize
                      + grid_i * xw.size * xw.dtype.itemsize
                      + n_pad * fout_pad * jnp.dtype(out_dtype).itemsize)

    return pl.pallas_call(
        partial(_adj_matmul_kernel, apply_relu=apply_relu),
        out_shape=jax.ShapeDtypeStruct((n_pad, fout_pad), out_dtype),
        grid_spec=pltpu.PrefetchScalarGridSpec(
            num_scalar_prefetch=0,
            grid=(grid_i, grid_k),                       # K (contraction) last
            in_specs=[pl.BlockSpec((tm, tk), lambda i, k: (i, k)),
                      pl.BlockSpec((tk, fout_pad), lambda i, k: (k, 0)),
                      pl.BlockSpec((1, fout_pad), lambda i, k: (0, 0))],
            out_specs=pl.BlockSpec((tm, fout_pad), lambda i, k: (i, 0)),
            scratch_shapes=[pltpu.VMEM((tm, fout_pad), jnp.float32)],
        ),
        compiler_params=pltpu.CompilerParams(
            dimension_semantics=("parallel", "arbitrary"),
            vmem_limit_bytes=VMEM_LIMIT),
        cost_estimate=pl.CostEstimate(flops=flops, transcendentals=0,
                                      bytes_accessed=bytes_accessed),
    )(a_hat, xw, b_p)


def masked_linear(x, w, m, b, *, tm):
    """x: [N_pad, Cin_pad] bf16; w, m: [Cout, Cin] f32 (PyTorch layout); b: [Cout]."""
    n_pad, cin_pad = x.shape
    cout = w.shape[0]
    cout_pad = _round_up(cout, 128)
    # Pre-transpose to [Cin, Cout] so the kernel contracts the natural axis
    # and the output is lane-dense (no masked partial stores on a 10-wide dim).
    w_t = _pad2d(w.T, cin_pad, cout_pad)
    m_t = _pad2d(m.T, cin_pad, cout_pad)
    b_p = _pad2d(b.reshape(1, -1).astype(jnp.float32), 1, cout_pad)
    return pl.pallas_call(
        _masked_linear_kernel,
        out_shape=jax.ShapeDtypeStruct((n_pad, cout_pad), jnp.float32),
        grid_spec=pltpu.PrefetchScalarGridSpec(
            num_scalar_prefetch=0,
            grid=(n_pad // tm,),
            in_specs=[pl.BlockSpec((tm, cin_pad), lambda i: (i, 0)),
                      pl.BlockSpec((cin_pad, cout_pad), lambda i: (0, 0)),
                      pl.BlockSpec((cin_pad, cout_pad), lambda i: (0, 0)),
                      pl.BlockSpec((1, cout_pad), lambda i: (0, 0))],
            out_specs=pl.BlockSpec((tm, cout_pad), lambda i: (i, 0)),
        ),
        compiler_params=pltpu.CompilerParams(
            dimension_semantics=("parallel",),
            vmem_limit_bytes=VMEM_LIMIT),
    )(x, w_t, m_t, b_p)


# ----------------------------------------------------------------------------
# Plain-JAX glue: PyG-style gcn_norm -> dense normalized adjacency
# ----------------------------------------------------------------------------
def gcn_norm_dense(edge_index, edge_weight, num_nodes):
    src = edge_index[0]
    dst = edge_index[1]
    a = jnp.zeros((num_nodes, num_nodes), jnp.float32).at[dst, src].add(edge_weight)
    a = a + jnp.eye(num_nodes, dtype=jnp.float32)       # add self loops (fill 1.0)
    deg = a.sum(axis=1)
    deg_inv_sqrt = jnp.where(deg > 0.0, 1.0 / jnp.sqrt(deg), 0.0)
    return deg_inv_sqrt[:, None] * a * deg_inv_sqrt[None, :]


# ----------------------------------------------------------------------------
# MaskedGCN forward (eval mode)
# ----------------------------------------------------------------------------
def masked_gcn_forward(params, x, edge_index, edge_weight, is_proxy=False):
    n, n_feat = x.shape
    n_dims = params["conv1_w"].shape[1]
    n_clss = params["clsif_w"].shape[0]

    # Tile choice: 256-deep/wide blocks match v6e/v7x MXU; 128 when N is small.
    # (Tiles are small enough to fit v7x's halved 64 MiB VMEM with headroom.)
    tile = 256 if n >= 256 else 128
    n_pad = _round_up(n, tile)
    fin_pad = _round_up(n_feat, 128)

    a_hat = gcn_norm_dense(edge_index, edge_weight, n)
    a_pad = _pad2d(a_hat, n_pad, n_pad).astype(jnp.bfloat16)   # bf16 MXU input
    x_pad = _pad2d(x, n_pad, fin_pad).astype(jnp.bfloat16)

    # conv1 + ReLU (dropout = identity in eval mode)
    xw1 = masked_feature_transform(x_pad, params["conv1_w"], params["conv1_m"], tm=tile)
    h1 = adj_matmul(a_pad, xw1, params["conv1_b"], apply_relu=True,
                    out_dtype=jnp.bfloat16, tm=tile, tk=tile)

    # conv2 (ReLU after conv2 is fused into the epilogue when not is_proxy)
    xw2 = masked_feature_transform(h1, params["conv2_w"], params["conv2_m"], tm=tile)
    if is_proxy:
        h2 = adj_matmul(a_pad, xw2, params["conv2_b"], apply_relu=False,
                        out_dtype=jnp.float32, tm=tile, tk=tile)
        return h2[:n, :n_dims]

    h2 = adj_matmul(a_pad, xw2, params["conv2_b"], apply_relu=True,
                    out_dtype=jnp.bfloat16, tm=tile, tk=tile)

    out = masked_linear(h2, params["clsif_w"], params["clsif_m"], params["clsif_b"],
                        tm=tile)
    return out[:n, :n_clss]


def init_params(key, n_feat, n_dims, n_clss):
    k1, k2, k3 = jax.random.split(key, 3)

    def glorot(k, shape):
        fan_in, fan_out = shape[-2], shape[-1]
        lim = jnp.sqrt(6.0 / (fan_in + fan_out))
        return jax.random.uniform(k, shape, jnp.float32, -lim, lim)

    return {
        # MaskedGCNConv weights are [in, out]; masks init to ones; bias zeros.
        "conv1_w": glorot(k1, (n_feat, n_dims)),
        "conv1_m": jnp.ones((n_feat, n_dims), jnp.float32),
        "conv1_b": jnp.zeros((n_dims,), jnp.float32),
        "conv2_w": glorot(k2, (n_dims, n_dims)),
        "conv2_m": jnp.ones((n_dims, n_dims), jnp.float32),
        "conv2_b": jnp.zeros((n_dims,), jnp.float32),
        # MaskedLinear weight is [out, in] (PyTorch nn.Linear convention).
        "clsif_w": glorot(k3, (n_clss, n_dims)),
        "clsif_m": jnp.ones((n_clss, n_dims), jnp.float32),
        "clsif_b": jnp.zeros((n_clss,), jnp.float32),
    }


if __name__ == "__main__":
    n_nodes, n_feat, n_dims, n_clss = 16, 10, 128, 10

    key = jax.random.PRNGKey(0)
    kx, kw, kp = jax.random.split(key, 3)

    # Node features
    x = jax.random.normal(kx, (n_nodes, n_feat), jnp.float32)

    # Simple bidirectional ring graph: 2 * n_nodes edges
    src = jnp.arange(n_nodes, dtype=jnp.int32)
    dst = (src + 1) % n_nodes
    edge_index = jnp.stack(
        [jnp.concatenate([src, dst]), jnp.concatenate([dst, src])], axis=0
    )  # [2, E]
    edge_weight = jax.random.uniform(kw, (edge_index.shape[1],), jnp.float32, 0.5, 1.5)

    params = init_params(kp, n_feat, n_dims, n_clss)

    logits = masked_gcn_forward(params, x, edge_index, edge_weight, is_proxy=False)
    jax.block_until_ready(logits)
    assert logits.shape == (n_nodes, n_clss)

    # Also exercise the proxy path (conv2 output, no classifier).
    proxy = masked_gcn_forward(params, x, edge_index, edge_weight, is_proxy=True)
    jax.block_until_ready(proxy)
    assert proxy.shape == (n_nodes, n_dims)

    # Reference check in plain f32 JAX (kernels use bf16 MXU inputs with f32
    # accumulation, so tolerance is loosened accordingly).
    a_hat = gcn_norm_dense(edge_index, edge_weight, n_nodes)
    h_ref = jnp.maximum(
        a_hat @ (x @ (params["conv1_w"] * params["conv1_m"])) + params["conv1_b"], 0.0)
    h_ref2 = a_hat @ (h_ref @ (params["conv2_w"] * params["conv2_m"])) + params["conv2_b"]
    h_ref3 = jnp.maximum(h_ref2, 0.0)
    ref = h_ref3 @ (params["clsif_w"] * params["clsif_m"]).T + params["clsif_b"]
    assert jnp.allclose(logits, ref, atol=3e-2, rtol=3e-2)
    assert jnp.allclose(proxy, h_ref2, atol=3e-2, rtol=3e-2)

    print("KERNEL_OK")
</pallas_src>

<mosaic_0001>
module attributes {stable_mosaic.version = 11 : i64} {
  func.func @_masked_xw_kernel(%arg0: i32, %arg1: memref<128x128xbf16, #tpu.memory_space<vmem>>, %arg2: memref<128x128xf32, #tpu.memory_space<vmem>>, %arg3: memref<128x128xf32, #tpu.memory_space<vmem>>, %arg4: memref<128x128xbf16, #tpu.memory_space<vmem>>) attributes {dimension_semantics = [#tpu.dimension_semantics<parallel>], iteration_bounds = array<i64: 1>, scalar_prefetch = 0 : i64, scratch_operands = 0 : i64, tpu.core_type = #tpu.core_type<tc>, window_params = [{transform_indices = @transform_0, window_bounds = array<i64: 128, 128>}, {pipeline_mode = #tpu.pipeline_mode<synchronous>, transform_indices = @transform_1, window_bounds = array<i64: 128, 128>}, {pipeline_mode = #tpu.pipeline_mode<synchronous>, transform_indices = @transform_2, window_bounds = array<i64: 128, 128>}, {transform_indices = @transform_3, window_bounds = array<i64: 128, 128>}]} {
    %c0 = arith.constant 0 : index
    %c0_0 = arith.constant 0 : index
    %0 = vector.load %arg2[%c0, %c0_0] : memref<128x128xf32, #tpu.memory_space<vmem>>, vector<128x128xf32>
    %c0_1 = arith.constant 0 : index
    %c0_2 = arith.constant 0 : index
    %1 = vector.load %arg3[%c0_1, %c0_2] : memref<128x128xf32, #tpu.memory_space<vmem>>, vector<128x128xf32>
    %2 = arith.mulf %0, %1 : vector<128x128xf32>
    %3 = arith.truncf %2 : vector<128x128xf32> to vector<128x128xbf16>
    %c0_3 = arith.constant 0 : index
    %c0_4 = arith.constant 0 : index
    %4 = vector.load %arg1[%c0_3, %c0_4] : memref<128x128xbf16, #tpu.memory_space<vmem>>, vector<128x128xbf16>
    %cst = arith.constant dense<0.000000e+00> : vector<128x128xf32>
    %5 = tpu.matmul %4, %3, %cst {dimension_numbers = #tpu.dot_dimension_numbers<[1], [0], [0], [1], [0, 0, 1, 1], [], []>} : vector<128x128xbf16>, vector<128x128xbf16>, vector<128x128xf32> -> vector<128x128xf32>
    %6 = arith.truncf %5 : vector<128x128xf32> to vector<128x128xbf16>
    %c0_5 = arith.constant 0 : index
    %c0_6 = arith.constant 0 : index
    %7 = vector.load %arg4[%c0_5, %c0_6] : memref<128x128xbf16, #tpu.memory_space<vmem>>, vector<128x128xbf16>
    tpu.vector_store %arg4[%c0_5, %c0_6], %6 {strides = array<i32>} : memref<128x128xbf16, #tpu.memory_space<vmem>>, vector<128x128xbf16>,
    return
  }
  func.func @transform_0(%arg0: i32) -> (i32, i32) {
    %c0_i32 = arith.constant 0 : i32
    %c0_i32_0 = arith.constant 0 : i32
    return %arg0, %c0_i32 : i32, i32
  }
  func.func @transform_1(%arg0: i32) -> (i32, i32) {
    %c0_i32 = arith.constant 0 : i32
    %c0_i32_0 = arith.constant 0 : i32
    %c0_i32_1 = arith.constant 0 : i32
    return %c0_i32, %c0_i32_0 : i32, i32
  }
  func.func @transform_2(%arg0: i32) -> (i32, i32) {
    %c0_i32 = arith.constant 0 : i32
    %c0_i32_0 = arith.constant 0 : i32
    %c0_i32_1 = arith.constant 0 : i32
    return %c0_i32, %c0_i32_0 : i32, i32
  }
  func.func @transform_3(%arg0: i32) -> (i32, i32) {
    %c0_i32 = arith.constant 0 : i32
    %c0_i32_0 = arith.constant 0 : i32
    return %arg0, %c0_i32 : i32, i32
  }
}

</mosaic_0001>

<bundles_post_ra>
// kernel: tpu_custom_call.1
= control target key start
LH: loop header
LB: loop body
LE: loop exit
PB: predicated region body
PF: predicated region fallthrough
CT: control target
= control target key end

     0   :  { %8 = vsyncpa [#allocation3], 0  ;;  %s671_s0 = inlined_call_operand.hbm [shape: bf16[128,128], index: 0, kind: input, shape index: {}]   ;;  %s672_s1 = inlined_call_operand.hbm [shape: f32[128,128], index: 1, kind: input, shape index: {}]   ;;  %s673_s2 = inlined_call_operand.hbm [shape: f32[128,128], index: 2, kind: input, shape index: {}]   ;;  %s674_s3 = inlined_call_operand.hbm [shape: bf16[128,128], index: 3, kind: output, shape index: {}]  }
   0x1   :  { %9 = vsyncpa [#allocation6], 0 }
   0x2   :  { %10 = vsyncpa [#allocation4], 0  ;;  %s625_s12 = smov [#allocation5]  }
   0x3   :  { %s28_s13 = sshll.u32 %s625_s12, 4  ;;  %s29_s13 = int_to_ptr.vmem [resolvable:$true] %s28_s13 }
   0x4   :  { %s547_s14 = scalar_lea.vmem %s29_s13, 2048  ;;  %p552_p1 = scmp.lt.s32.totalorder %s29_s13, %s29_s13 }
   0x5   :  { %p548_p0 = scmp.ne.s32.totalorder %s29_s13, %s547_s14  ;;  %p553_p2 = scmp.lt.s32.totalorder %s547_s14, %s547_s14 }
   0x7   :  { %p554_p3 = por %p553_p2, %p552_p1 }
   0x9   :  { %p555_p4 = pnand %p554_p3, %p548_p0 }
   0xb   :  { %558 = shalt.err (!%p555_p4)
}
   0xc   :  { %s626_s15 = smov 128   ;;  %s627_s16 = smov 8  }
   0xd   :  { %34 = dma.hbm_to_vmem [thread:$0]  %s672_s1, 2048, %s29_s13, [#allocation6], %s626_s15, %s626_s15, %s627_s16  }
   0xe   :  { %s628_s19 = smov [#allocation2]  }
   0xf   :  { %s16_s20 = sshll.u32 %s628_s19, 4  ;;  %s17_s20 = int_to_ptr.vmem [resolvable:$true] %s16_s20 }
  0x10   :  { %s567_s21 = scalar_lea.vmem %s17_s20, 1024  ;;  %p572_p6 = scmp.lt.s32.totalorder %s17_s20, %s17_s20 }
  0x11   :  { %p568_p5 = scmp.ne.s32.totalorder %s17_s20, %s567_s21  ;;  %p573_p7 = scmp.lt.s32.totalorder %s567_s21, %s567_s21 }
  0x13   :  { %p574_p8 = por %p573_p7, %p572_p6 }
  0x15   :  { %p575_p9 = pnand %p574_p8, %p568_p5 }
  0x17   :  { %578 = shalt.err (!%p575_p9)
}
  0x18   :  { %s629_s22 = smov 64   ;;  %s630_s23 = smov 4  }
  0x19   :  { %22 = dma.hbm_to_vmem [thread:$0]  %s671_s0, 1024, %s17_s20, [#allocation3], %s629_s22, %s629_s22, %s630_s23  }
  0x1a   :  { %s631_s1 = smov [#allocation7]  }
  0x1b   :  { %s40_s26 = sshll.u32 %s631_s1, 4  ;;  %s41_s26 = int_to_ptr.vmem [resolvable:$true] %s40_s26 }
  0x1c   :  { %s587_s27 = scalar_lea.vmem %s41_s26, 2048  ;;  %p592_p11 = scmp.lt.s32.totalorder %s41_s26, %s41_s26 }
  0x1d   :  { %p588_p10 = scmp.ne.s32.totalorder %s41_s26, %s587_s27  ;;  %p593_p12 = scmp.lt.s32.totalorder %s587_s27, %s587_s27 }
  0x1f   :  { %p594_p13 = por %p593_p12, %p592_p11 }
  0x21   :  { %p595_p0 = pnand %p594_p13, %p588_p10 }
  0x23   :  { %598 = shalt.err (!%p595_p0)
}
  0x24   :  { %46 = dma.hbm_to_vmem [thread:$0]  %s673_s2, 2048, %s41_s26, [#allocation6], %s626_s15, %s626_s15, %s627_s16  }
  0x25   :  { %619 = dma.done.wait [#allocation3], 1024  }
  0x26   :  { %620 = vsyncadd [#allocation3], 4294966272 }
  0x27   :  { %621 = dma.done.wait [#allocation6], 4096  }
  0x28   :  { %622 = vsyncadd [#allocation6], 4294963200  ;;  %v71_v0 = vld [vmem:[#allocation5 + $0x70] sm:$0xff]  ;;  %v72_v1 = vld [vmem:[#allocation5 + $0x78] sm:$0xff]  ;;  %s632_s0 = smov [#allocation8]  }
  0x29   :  { %v87_v2 = vld [vmem:[#allocation7 + $0x70] sm:$0xff]  ;;  %v88_v3 = vld [vmem:[#allocation7 + $0x78] sm:$0xff]  ;;  %v69_v5 = vld [vmem:[#allocation5 + $0x60] sm:$0xff]  ;;  %s359_s2 = sshll.u32 %s632_s0, 4  ;;  %s360_s2 = int_to_ptr.vmem [resolvable:$true] %s359_s2 }
  0x2a   :  { %v103_v4 = vmul.f32 %v87_v2, %v71_v0  ;;  %v70_v6 = vld [vmem:[#allocation5 + $0x68] sm:$0xff]  ;;  %v104_v7 = vmul.f32 %v88_v3, %v72_v1  ;;  %v85_v8 = vld [vmem:[#allocation7 + $0x60] sm:$0xff]  ;;  %v67_v10 = vld [vmem:[#allocation5 + $0x50] sm:$0xff]  ;;  %s599_s30 = scalar_lea.vmem %s360_s2, 1024  ;;  %p604_p2 = scmp.lt.s32.totalorder %s360_s2, %s360_s2 }
  0x2b   :  { %v86_v9 = vld [vmem:[#allocation7 + $0x68] sm:$0xff]  ;;  %v101_v11 = vmul.f32 %v85_v8, %v69_v5  ;;  %v68_v13 = vld [vmem:[#allocation5 + $0x58] sm:$0xff]  ;;  %v83_v14 = vld [vmem:[#allocation7 + $0x50] sm:$0xff]  ;;  %p600_p1 = scmp.ne.s32.totalorder %s360_s2, %s599_s30  ;;  %p605_p3 = scmp.lt.s32.totalorder %s599_s30, %s599_s30 }
  0x2c   :  { %v102_v12 = vmul.f32 %v86_v9, %v70_v6  ;;  %v84_v15 = vld [vmem:[#allocation7 + $0x58] sm:$0xff]  ;;  %v112_v16 = vpack.c.bf16 %v104_v7, %v103_v4  ;;  %v99_v17 = vmul.f32 %v83_v14, %v67_v10  ;;  %v65_v19 = vld [vmem:[#allocation5 + $0x40] sm:$0xff]  ;;  %v66_v21 = vld [vmem:[#allocation5 + $0x48] sm:$0xff] }
  0x2d   :  { %v100_v18 = vmul.f32 %v84_v15, %v68_v13  ;;  %v81_v22 = vld [vmem:[#allocation7 + $0x40] sm:$0xff]  ;;  %v82_v23 = vld [vmem:[#allocation7 + $0x48] sm:$0xff]  ;;  %v63_v27 = vld [vmem:[#allocation5 + $0x30] sm:$0xff]  ;;  %p606_p4 = por %p605_p3, %p604_p2 }
  0x2e   :  { %v111_v20 = vpack.c.bf16 %v102_v12, %v101_v11  ;;  %475 = vmatprep.subr.bf16.mxu0 %v112_v16  ;;  %507 = vmatprep.subr.bf16.mxu1 %v112_v16  ;;  %v97_v25 = vmul.f32 %v81_v22, %v65_v19  ;;  %v98_v26 = vmul.f32 %v82_v23, %v66_v21  ;;  %v64_v28 = vld [vmem:[#allocation5 + $0x38] sm:$0xff]  ;;  %v79_v29 = vld [vmem:[#allocation7 + $0x30] sm:$0xff]  ;;  %v61_v31 = vld [vmem:[#allocation5 + $0x20] sm:$0xff] }
  0x2f   :  { %476 = vmatpush3.bf16.msra.mxu0 %v112_v16  ;;  %515 = vmatpush3.bf16.msra.mxu1 %v112_v16  ;;  %v110_v24 = vpack.c.bf16 %v100_v18, %v99_v17  ;;  %v80_v30 = vld [vmem:[#allocation7 + $0x38] sm:$0xff]  ;;  %v62_v32 = vld [vmem:[#allocation5 + $0x28] sm:$0xff]  ;;  %v77_v33 = vld [vmem:[#allocation7 + $0x20] sm:$0xff]  ;;  %v95_v36 = vmul.f32 %v79_v29, %v63_v27  ;;  %p607_p5 = pnand %p606_p4, %p600_p1 }
  0x30   :  { %477 = vmatprep.subr.bf16.mxu0 %v111_v20  ;;  %508 = vmatprep.subr.bf16.mxu1 %v111_v20  ;;  %v531_v34 = vld [vmem:[#allocation2] sm:$0xff]   ;;  %v109_v35 = vpack.c.bf16 %v98_v26, %v97_v25  ;;  %v96_v37 = vmul.f32 %v80_v30, %v64_v28  ;;  %v78_v39 = vld [vmem:[#allocation7 + $0x28] sm:$0xff]  ;;  %v59_v40 = vld [vmem:[#allocation5 + $0x10] sm:$0xff]  ;;  %v93_v43 = vmul.f32 %v77_v33, %v61_v31 }
  0x31   :  { %v532_v38 = vld [vmem:[#allocation2 + $0x20] sm:$0xff]   ;;  %491 = vmatprep.mubr.bf16.mxu0 %v531_v34  ;;  %v60_v41 = vld [vmem:[#allocation5 + $0x18] sm:$0xff]  ;;  %v94_v44 = vmul.f32 %v78_v39, %v62_v32  ;;  %v75_v45 = vld [vmem:[#allocation7 + $0x10] sm:$0xff] }
  0x32   :  { %499 = vmatprep.mubr.bf16.mxu1 %v532_v38  ;;  %v108_v42 = vpack.c.bf16 %v96_v37, %v95_v36  ;;  %v76_v46 = vld [vmem:[#allocation7 + $0x18] sm:$0xff]  ;;  %v91_v48 = vmul.f32 %v75_v45, %v59_v40  ;;  %v57_v50 = vld [vmem:[#allocation5] sm:$0xff]  ;;  %v58_v51 = vld [vmem:[#allocation5 + $0x8] sm:$0xff] }
  0x33   :  { %478 = vmatpush3.bf16.msra.mxu0 %v111_v20  ;;  %516 = vmatpush3.bf16.msra.mxu1 %v111_v20  ;;  %v107_v47 = vpack.c.bf16 %v94_v44, %v93_v43  ;;  %v92_v49 = vmul.f32 %v76_v46, %v60_v41  ;;  %v73_v52 = vld [vmem:[#allocation7] sm:$0xff]  ;;  %v74_v53 = vld [vmem:[#allocation7 + $0x8] sm:$0xff]  ;;  %v535_v60 = vld [vmem:[#allocation2 + $0x10] sm:$0xff]  }
  0x34   :  { %479 = vmatprep.subr.bf16.mxu0 %v110_v24  ;;  %509 = vmatprep.subr.bf16.mxu1 %v110_v24  ;;  %v89_v55 = vmul.f32 %v73_v52, %v57_v50  ;;  %v90_v56 = vmul.f32 %v74_v53, %v58_v51  ;;  %v533_v58 = vld [vmem:[#allocation2 + $0x8] sm:$0xff]   ;;  %v536_v61 = vld [vmem:[#allocation2 + $0x30] sm:$0xff]   ;;  %v537_v62 = vld [vmem:[#allocation2 + $0x18] sm:$0xff]  }
  0x35   :  { %v106_v54 = vpack.c.bf16 %v92_v49, %v91_v48  ;;  %v534_v59 = vld [vmem:[#allocation2 + $0x28] sm:$0xff]   ;;  %v538_v63 = vld [vmem:[#allocation2 + $0x38] sm:$0xff]  }
  0x36   :  { %v105_v57 = vpack.c.bf16 %v90_v56, %v89_v55 }
  0x37   :  { %480 = vmatpush3.bf16.msra.mxu0 %v110_v24  ;;  %517 = vmatpush3.bf16.msra.mxu1 %v110_v24 }
  0x38   :  { %481 = vmatprep.subr.bf16.mxu0 %v109_v35  ;;  %510 = vmatprep.subr.bf16.mxu1 %v109_v35 }
  0x3b   :  { %482 = vmatpush3.bf16.msra.mxu0 %v109_v35  ;;  %518 = vmatpush3.bf16.msra.mxu1 %v109_v35 }
  0x3c   :  { %483 = vmatprep.subr.bf16.mxu0 %v108_v42  ;;  %511 = vmatprep.subr.bf16.mxu1 %v108_v42 }
  0x3f   :  { %484 = vmatpush3.bf16.msra.mxu0 %v108_v42  ;;  %519 = vmatpush3.bf16.msra.mxu1 %v108_v42 }
  0x40   :  { %485 = vmatprep.subr.bf16.mxu0 %v107_v47  ;;  %512 = vmatprep.subr.bf16.mxu1 %v107_v47 }
  0x43   :  { %486 = vmatpush3.bf16.msra.mxu0 %v107_v47  ;;  %520 = vmatpush3.bf16.msra.mxu1 %v107_v47 }
  0x44   :  { %487 = vmatprep.subr.bf16.mxu0 %v106_v54  ;;  %513 = vmatprep.subr.bf16.mxu1 %v106_v54 }
  0x47   :  { %488 = vmatpush3.bf16.msra.mxu0 %v106_v54  ;;  %521 = vmatpush3.bf16.msra.mxu1 %v106_v54 }
  0x48   :  { %489 = vmatprep.subr.bf16.mxu0 %v105_v57  ;;  %514 = vmatprep.subr.bf16.mxu1 %v105_v57 }
  0x4b   :  { %490 = vmatpush3.bf16.msra.mxu0 %v105_v57  ;;  %522 = vmatpush3.bf16.msra.mxu1 %v105_v57 }
  0x4e   :  { %492 = vmatmul.mubr.bf16.vlgmr.msra.gmra.mxu0 %v533_v58  ;;  %500 = vmatmul.mubr.bf16.vlgmr.msra.gmra.mxu1 %v534_v59 }
  0x4f   :  { %495 = vmatprep.mubr.bf16.mxu0 %v535_v60  ;;  %503 = vmatprep.mubr.bf16.mxu1 %v536_v61 }
  0x56   :  { %496 = vmatmul.mubr.bf16.gmra.mxu0 %v537_v62  ;;  %504 = vmatmul.mubr.bf16.gmra.mxu1 %v538_v63 }
 0x10e   :  { %v493_v0 = vpop.f32.mrf.mxu0  ;;  %v501_v1 = vpop.f32.mrf.mxu1 }
 0x110   :  { %v211_v2 = vpop.f32.mrf.mxu0  ;;  %v243_v3 = vpop.f32.mrf.mxu1 }
 0x112   :  { %v494_v4 = vpop.f32.mrf.mxu0  ;;  %v502_v5 = vpop.f32.mrf.mxu1 }
 0x113   :  { %v420_v6 = vpack.c.bf16 %v494_v4, %v493_v0  ;;  %v440_v7 = vpack.c.bf16 %v502_v5, %v501_v1 }
 0x114   :  { %v214_v8 = vpop.f32.mrf.mxu0  ;;  %v246_v9 = vpop.f32.mrf.mxu1 }
 0x115   :  { %452 = vst [vmem:[#allocation8 + $0x8] sm:$0xff] %v420_v6   ;;  %456 = vst [vmem:[#allocation8 + $0x28] sm:$0xff] %v440_v7   ;;  %v415_v10 = vpack.c.bf16 %v214_v8, %v211_v2  ;;  %v435_v11 = vpack.c.bf16 %v246_v9, %v243_v3 }
 0x116   :  { %v497_v12 = vpop.f32.mrf.mxu0  ;;  %v505_v13 = vpop.f32.mrf.mxu1 }
 0x117   :  { %416 = vst [vmem:[#allocation8] sm:$0xff] %v415_v10   ;;  %455 = vst [vmem:[#allocation8 + $0x20] sm:$0xff] %v435_v11  }
 0x118   :  { %v227_v14 = vpop.f32.mrf.mxu0  ;;  %v259_v15 = vpop.f32.mrf.mxu1 }
 0x11a   :  { %v498_v16 = vpop.f32.mrf.mxu0  ;;  %v506_v17 = vpop.f32.mrf.mxu1 }
 0x11b   :  { %v430_v18 = vpack.c.bf16 %v498_v16, %v497_v12  ;;  %v450_v19 = vpack.c.bf16 %v506_v17, %v505_v13 }
 0x11c   :  { %v230_v20 = vpop.f32.mrf.mxu0  ;;  %v262_v21 = vpop.f32.mrf.mxu1 }
 0x11d   :  { %454 = vst [vmem:[#allocation8 + $0x18] sm:$0xff] %v430_v18   ;;  %458 = vst [vmem:[#allocation8 + $0x38] sm:$0xff] %v450_v19   ;;  %v425_v22 = vpack.c.bf16 %v230_v20, %v227_v14  ;;  %v445_v23 = vpack.c.bf16 %v262_v21, %v259_v15 }
 0x11f   :  { %453 = vst [vmem:[#allocation8 + $0x10] sm:$0xff] %v425_v22   ;;  %457 = vst [vmem:[#allocation8 + $0x30] sm:$0xff] %v445_v23  }
 0x120   :  { %610 = shalt.err (!%p607_p5)
}
 0x121   :  { %365 = dma.vmem_to_hbm [thread:$0]  %s360_s2, 1024, %s674_s3, [#allocation4], %s629_s22, %s629_s22, %s630_s23  }
 0x122   :  { %623 = dma.done.wait [#allocation4], 1024  }
 0x123   :  { %624 = vsyncadd [#allocation4], 4294966272 }
 0x124   :  { %369 = vsyncpa [#allocation3], 1 }
 0x125   :  { %370 = vsyncpa [#allocation6], 1 }
 0x126   :  { %371 = vsyncpa [#allocation4], 1 }

</bundles_post_ra>
